<compile_context>
chip_gen: v7x
topology: tpu7x:2x2x1
jax: 0.10.0
libtpu: 0.0.40
codegen_flags: <defaults>
</compile_context>

<pallas_src>
import jax
import jax.numpy as jnp
import numpy as np
from jax.experimental import pallas as pl
from jax.experimental.pallas import tpu as pltpu


def tuning_block_kernel(x_ref, w0_ref, w1_ref, o_ref, xpad_ref, mid_ref):
    # x_ref  : (Bt, H, L)   Bt packed-batch slabs; L = lane_pack*W*C lanes
    # w0_ref : (3, L, L)    block-diagonal banded weights of conv0 (one per dy)
    # w1_ref : (3, L, L)    block-diagonal banded weights of conv1
    # o_ref  : (Bt, H, L)
    # xpad_ref, mid_ref : VMEM scratch (Bt*(H+2), L); per-element zero-bordered
    #                     slabs laid back-to-back with stride H+2.
    Bt, H, L = o_ref.shape
    Hp = H + 2
    M = Bt * Hp - 2                       # rows fed to each banded matmul

    zrow_x = jnp.zeros((1, L), xpad_ref.dtype)
    zrow_m = jnp.zeros((1, L), mid_ref.dtype)

    # Fill the zero-bordered input slabs (in-kernel 'SAME' padding along H).
    for t in range(Bt):
        base = t * Hp
        xpad_ref[base:base + 1, :] = zrow_x
        xpad_ref[base + 1:base + 1 + H, :] = x_ref[t].astype(xpad_ref.dtype)
        xpad_ref[base + H + 1:base + H + 2, :] = zrow_x
        # Only the border rows of mid need (re-)zeroing; interiors are written below.
        mid_ref[base:base + 1, :] = zrow_m
        mid_ref[base + H + 1:base + H + 2, :] = zrow_m

    # ---- conv0 (3x3, pad=1, no bias): 3 banded matmuls over dy ----
    acc = jnp.dot(xpad_ref[0:M, :], w0_ref[0], preferred_element_type=jnp.float32)
    acc = acc + jnp.dot(xpad_ref[1:M + 1, :], w0_ref[1],
                        preferred_element_type=jnp.float32)
    acc = acc + jnp.dot(xpad_ref[2:M + 2, :], w0_ref[2],
                        preferred_element_type=jnp.float32)
    acc = jnp.maximum(acc, 0.0)           # ReLU

    # Valid rows for element t are acc[t*Hp : t*Hp+H]; write them into the
    # interior of its zero-bordered mid slab (garbage rows between elements
    # are never stored).
    for t in range(Bt):
        base = t * Hp
        mid_ref[base + 1:base + 1 + H, :] = acc[base:base + H, :].astype(mid_ref.dtype)

    # ---- conv1 (3x3, pad=1, no bias) ----
    acc = jnp.dot(mid_ref[0:M, :], w1_ref[0], preferred_element_type=jnp.float32)
    acc = acc + jnp.dot(mid_ref[1:M + 1, :], w1_ref[1],
                        preferred_element_type=jnp.float32)
    acc = acc + jnp.dot(mid_ref[2:M + 2, :], w1_ref[2],
                        preferred_element_type=jnp.float32)

    for t in range(Bt):
        base = t * Hp
        o_ref[t] = acc[base:base + H, :].astype(o_ref.dtype)


def _band_conv_weights(w_hwio, W):
    """HWIO (3,3,Cin,Cout) weights -> (3, W*Cin, W*Cout) banded matrices.

    band[dy][u*Cin + ci, x*Cout + co] = w[dy, dx, ci, co] with u = x + dx - 1,
    terms with u outside [0, W) dropped (== zero 'SAME' padding along W).
    """
    kh, kw, Cin, Cout = w_hwio.shape
    assert kh == 3 and kw == 3, "TuningBlock uses 3x3 convs"
    band = jnp.zeros((kh, W * Cin, W * Cout), w_hwio.dtype)
    for dx in range(kw):
        shift = dx - (kw // 2)                          # -1, 0, +1
        sel = jnp.eye(W, k=-shift, dtype=w_hwio.dtype)  # sel[u,x]=1 iff u==x+shift
        blk = jnp.einsum('ux,dij->duixj', sel, w_hwio[:, dx])
        band = band + blk.reshape(kh, W * Cin, W * Cout)
    return band


def _block_diag_band(band, pack):
    """(3, K, N) banded matrices -> (3, pack*K, pack*N) block-diagonal."""
    kh, K, N = band.shape
    eye = jnp.eye(pack, dtype=band.dtype)
    big = jnp.einsum('pq,dij->dpiqj', eye, band)
    return big.reshape(kh, pack * K, pack * N)


def tuning_block(x_nchw, w0_hwio, w1_hwio, *, lane_pack=None, batch_block=None):
    """Forward pass of TuningBlock. x_nchw: (B, C, H, W). Returns (B, C, H, W)."""
    B, C, H, W = x_nchw.shape
    assert w0_hwio.shape == (3, 3, C, C) and w1_hwio.shape == (3, 3, C, C), \
        "TuningBlock requires C_in == C_out == input channel count"

    WC = W * C
    # Pack enough batch elements on the lane axis to reach >= 128 lanes.
    if lane_pack is None:
        lane_pack = max(1, -(-128 // WC))
    L = lane_pack * WC

    # NCHW -> NHWC -> (B, H, W*C) lane-dense slabs.
    # (A model that already carries (B, H, W*C) activations can skip these
    #  transposes and call the pallas_call path directly.)
    x = jnp.transpose(x_nchw, (0, 2, 3, 1)).reshape(B, H, WC)

    # Pad batch up to a multiple of lane_pack * batch_block.
    if batch_block is None:
        batch_block = 2 if B >= 2 * lane_pack else 1
    group = lane_pack * batch_block
    Bp = -(-B // group) * group
    if Bp != B:
        x = jnp.pad(x, ((0, Bp - B), (0, 0), (0, 0)))
    Bs = Bp // lane_pack                   # number of packed "super" elements

    # (Bp, H, WC) -> (Bs, H, L): lane_pack elements side by side on the lane axis.
    xs = x.reshape(Bs, lane_pack, H, WC).transpose(0, 2, 1, 3).reshape(Bs, H, L)

    # Banded + block-diagonal weights, built once on the host side.
    w0b = _block_diag_band(_band_conv_weights(w0_hwio, W), lane_pack).astype(x.dtype)
    w1b = _block_diag_band(_band_conv_weights(w1_hwio, W), lane_pack).astype(x.dtype)

    Bt = batch_block
    grid = (Bs // Bt,)
    M = Bt * (H + 2) - 2
    itemsize = jnp.dtype(x.dtype).itemsize
    cost = pl.CostEstimate(
        flops=int(grid[0] * 6 * 2 * M * L * L),
        transcendentals=0,
        bytes_accessed=int((2 * Bs * H * L + 2 * 3 * L * L) * itemsize),
    )

    out = pl.pallas_call(
        tuning_block_kernel,
        out_shape=jax.ShapeDtypeStruct((Bs, H, L), x.dtype),
        grid_spec=pltpu.PrefetchScalarGridSpec(
            num_scalar_prefetch=0,
            grid=grid,
            in_specs=[
                pl.BlockSpec((Bt, H, L), lambda s: (s, 0, 0)),
                pl.BlockSpec((3, L, L), lambda s: (0, 0, 0)),
                pl.BlockSpec((3, L, L), lambda s: (0, 0, 0)),
            ],
            out_specs=pl.BlockSpec((Bt, H, L), lambda s: (s, 0, 0)),
            scratch_shapes=[
                pltpu.VMEM((Bt * (H + 2), L), x.dtype),   # zero-bordered input slabs
                pltpu.VMEM((Bt * (H + 2), L), x.dtype),   # zero-bordered ReLU(conv0)
            ],
        ),
        compiler_params=pltpu.CompilerParams(
            dimension_semantics=("parallel",)),
        cost_estimate=cost,
    )(xs, w0b, w1b)

    # Unpack lanes, drop batch padding, back to NCHW.
    out = out.reshape(Bs, H, lane_pack, WC).transpose(0, 2, 1, 3).reshape(Bp, H, WC)
    out = out[:B].reshape(B, H, W, C)
    return jnp.transpose(out, (0, 3, 1, 2))


def _reference(x_nchw, w0_hwio, w1_hwio):
    """Pure-JAX reference (same semantics as the PyTorch module)."""
    x = jnp.transpose(x_nchw, (0, 2, 3, 1))
    dn = ("NHWC", "HWIO", "NHWC")
    y = jax.lax.conv_general_dilated(x, w0_hwio, (1, 1), "SAME",
                                     dimension_numbers=dn)
    y = jnp.maximum(y, 0.0)
    y = jax.lax.conv_general_dilated(y, w1_hwio, (1, 1), "SAME",
                                     dimension_numbers=dn)
    return jnp.transpose(y, (0, 3, 1, 2))


if __name__ == "__main__":
    # input_size == C.  B=8 so that lane-packing (x2 -> 128 lanes) and batch
    # blocking (Bt=2 super-elements/step) both engage and the grid has 2 steps.
    B, C, H, W = 8, 4, 16, 16
    key = jax.random.PRNGKey(0)
    kx, k0, k1 = jax.random.split(key, 3)

    x = jax.random.normal(kx, (B, C, H, W), dtype=jnp.float32)
    # default_conv(..., bias=False, init_scale=0.1): synthetic 0.1-scaled weights
    # stored directly in HWIO layout.
    w0 = 0.1 * jax.random.normal(k0, (3, 3, C, C), dtype=jnp.float32)
    w1 = 0.1 * jax.random.normal(k1, (3, 3, C, C), dtype=jnp.float32)

    out = tuning_block(x, w0, w1)
    jax.block_until_ready(out)

    ref = _reference(x, w0, w1)
    np.testing.assert_allclose(np.asarray(out), np.asarray(ref),
                               rtol=1e-4, atol=1e-4)
    print("KERNEL_OK")
</pallas_src>

<mosaic_0001>
module attributes {stable_mosaic.version = 11 : i64} {
  func.func @tuning_block_kernel(%arg0: i32, %arg1: memref<2x16x128xf32, #tpu.memory_space<vmem>>, %arg2: memref<3x128x128xf32, #tpu.memory_space<vmem>>, %arg3: memref<3x128x128xf32, #tpu.memory_space<vmem>>, %arg4: memref<2x16x128xf32, #tpu.memory_space<vmem>>, %arg5: memref<36x128xf32, #tpu.memory_space<vmem>>, %arg6: memref<36x128xf32, #tpu.memory_space<vmem>>) attributes {dimension_semantics = [#tpu.dimension_semantics<parallel>], iteration_bounds = array<i64: 2>, scalar_prefetch = 0 : i64, scratch_operands = 2 : i64, tpu.core_type = #tpu.core_type<tc>, window_params = [{transform_indices = @transform_0, window_bounds = array<i64: 2, 16, 128>}, {pipeline_mode = #tpu.pipeline_mode<synchronous>, transform_indices = @transform_1, window_bounds = array<i64: 3, 128, 128>}, {pipeline_mode = #tpu.pipeline_mode<synchronous>, transform_indices = @transform_2, window_bounds = array<i64: 3, 128, 128>}, {transform_indices = @transform_3, window_bounds = array<i64: 2, 16, 128>}]} {
    %cst = arith.constant 0.000000e+00 : f32
    %0 = vector.broadcast %cst : f32 to vector<1x128xf32>
    %cst_0 = arith.constant 0.000000e+00 : f32
    %1 = vector.broadcast %cst_0 : f32 to vector<1x128xf32>
    %c0 = arith.constant 0 : index
    %c0_1 = arith.constant 0 : index
    %2 = vector.load %arg5[%c0, %c0_1] : memref<36x128xf32, #tpu.memory_space<vmem>>, vector<1x128xf32>
    tpu.vector_store %arg5[%c0, %c0_1], %0 {strides = array<i32>} : memref<36x128xf32, #tpu.memory_space<vmem>>, vector<1x128xf32>,
    %c0_2 = arith.constant 0 : index
    %c0_3 = arith.constant 0 : index
    %c0_4 = arith.constant 0 : index
    %3 = vector.load %arg1[%c0_2, %c0_3, %c0_4] : memref<2x16x128xf32, #tpu.memory_space<vmem>>, vector<1x16x128xf32>
    %4 = vector.shape_cast %3 : vector<1x16x128xf32> to vector<16x128xf32>
    %c1 = arith.constant 1 : index
    %c0_5 = arith.constant 0 : index
    %5 = vector.load %arg5[%c1, %c0_5] : memref<36x128xf32, #tpu.memory_space<vmem>>, vector<16x128xf32>
    tpu.vector_store %arg5[%c1, %c0_5], %4 {strides = array<i32>} : memref<36x128xf32, #tpu.memory_space<vmem>>, vector<16x128xf32>,
    %c17 = arith.constant 17 : index
    %c0_6 = arith.constant 0 : index
    %6 = vector.load %arg5[%c17, %c0_6] : memref<36x128xf32, #tpu.memory_space<vmem>>, vector<1x128xf32>
    tpu.vector_store %arg5[%c17, %c0_6], %0 {strides = array<i32>} : memref<36x128xf32, #tpu.memory_space<vmem>>, vector<1x128xf32>,
    %c0_7 = arith.constant 0 : index
    %c0_8 = arith.constant 0 : index
    %7 = vector.load %arg6[%c0_7, %c0_8] : memref<36x128xf32, #tpu.memory_space<vmem>>, vector<1x128xf32>
    tpu.vector_store %arg6[%c0_7, %c0_8], %1 {strides = array<i32>} : memref<36x128xf32, #tpu.memory_space<vmem>>, vector<1x128xf32>,
    %c17_9 = arith.constant 17 : index
    %c0_10 = arith.constant 0 : index
    %8 = vector.load %arg6[%c17_9, %c0_10] : memref<36x128xf32, #tpu.memory_space<vmem>>, vector<1x128xf32>
    tpu.vector_store %arg6[%c17_9, %c0_10], %1 {strides = array<i32>} : memref<36x128xf32, #tpu.memory_space<vmem>>, vector<1x128xf32>,
    %c18 = arith.constant 18 : index
    %c0_11 = arith.constant 0 : index
    %9 = vector.load %arg5[%c18, %c0_11] : memref<36x128xf32, #tpu.memory_space<vmem>>, vector<1x128xf32>
    tpu.vector_store %arg5[%c18, %c0_11], %0 {strides = array<i32>} : memref<36x128xf32, #tpu.memory_space<vmem>>, vector<1x128xf32>,
    %c1_12 = arith.constant 1 : index
    %c0_13 = arith.constant 0 : index
    %c0_14 = arith.constant 0 : index
    %10 = vector.load %arg1[%c1_12, %c0_13, %c0_14] : memref<2x16x128xf32, #tpu.memory_space<vmem>>, vector<1x16x128xf32>
    %11 = vector.shape_cast %10 : vector<1x16x128xf32> to vector<16x128xf32>
    %c19 = arith.constant 19 : index
    %c0_15 = arith.constant 0 : index
    %12 = vector.load %arg5[%c19, %c0_15] : memref<36x128xf32, #tpu.memory_space<vmem>>, vector<16x128xf32>
    tpu.vector_store %arg5[%c19, %c0_15], %11 {strides = array<i32>} : memref<36x128xf32, #tpu.memory_space<vmem>>, vector<16x128xf32>,
    %c35 = arith.constant 35 : index
    %c0_16 = arith.constant 0 : index
    %13 = vector.load %arg5[%c35, %c0_16] : memref<36x128xf32, #tpu.memory_space<vmem>>, vector<1x128xf32>
    tpu.vector_store %arg5[%c35, %c0_16], %0 {strides = array<i32>} : memref<36x128xf32, #tpu.memory_space<vmem>>, vector<1x128xf32>,
    %c18_17 = arith.constant 18 : index
    %c0_18 = arith.constant 0 : index
    %14 = vector.load %arg6[%c18_17, %c0_18] : memref<36x128xf32, #tpu.memory_space<vmem>>, vector<1x128xf32>
    tpu.vector_store %arg6[%c18_17, %c0_18], %1 {strides = array<i32>} : memref<36x128xf32, #tpu.memory_space<vmem>>, vector<1x128xf32>,
    %c35_19 = arith.constant 35 : index
    %c0_20 = arith.constant 0 : index
    %15 = vector.load %arg6[%c35_19, %c0_20] : memref<36x128xf32, #tpu.memory_space<vmem>>, vector<1x128xf32>
    tpu.vector_store %arg6[%c35_19, %c0_20], %1 {strides = array<i32>} : memref<36x128xf32, #tpu.memory_space<vmem>>, vector<1x128xf32>,
    %c0_21 = arith.constant 0 : index
    %c0_22 = arith.constant 0 : index
    %16 = vector.load %arg5[%c0_21, %c0_22] : memref<36x128xf32, #tpu.memory_space<vmem>>, vector<34x128xf32>
    %c0_23 = arith.constant 0 : index
    %c0_24 = arith.constant 0 : index
    %c0_25 = arith.constant 0 : index
    %17 = vector.load %arg2[%c0_23, %c0_24, %c0_25] : memref<3x128x128xf32, #tpu.memory_space<vmem>>, vector<1x128x128xf32>
    %18 = vector.shape_cast %17 : vector<1x128x128xf32> to vector<128x128xf32>
    %cst_26 = arith.constant dense<0.000000e+00> : vector<34x128xf32>
    %19 = tpu.matmul %16, %18, %cst_26 {dimension_numbers = #tpu.dot_dimension_numbers<[1], [0], [0], [1], [0, 0, 1, 1], [], []>} : vector<34x128xf32>, vector<128x128xf32>, vector<34x128xf32> -> vector<34x128xf32>
    %c1_27 = arith.constant 1 : index
    %c0_28 = arith.constant 0 : index
    %20 = vector.load %arg5[%c1_27, %c0_28] : memref<36x128xf32, #tpu.memory_space<vmem>>, vector<34x128xf32>
    %c1_29 = arith.constant 1 : index
    %c0_30 = arith.constant 0 : index
    %c0_31 = arith.constant 0 : index
    %21 = vector.load %arg2[%c1_29, %c0_30, %c0_31] : memref<3x128x128xf32, #tpu.memory_space<vmem>>, vector<1x128x128xf32>
    %22 = vector.shape_cast %21 : vector<1x128x128xf32> to vector<128x128xf32>
    %cst_32 = arith.constant dense<0.000000e+00> : vector<34x128xf32>
    %23 = tpu.matmul %20, %22, %cst_32 {dimension_numbers = #tpu.dot_dimension_numbers<[1], [0], [0], [1], [0, 0, 1, 1], [], []>} : vector<34x128xf32>, vector<128x128xf32>, vector<34x128xf32> -> vector<34x128xf32>
    %24 = arith.addf %19, %23 : vector<34x128xf32>
    %c2 = arith.constant 2 : index
    %c0_33 = arith.constant 0 : index
    %25 = vector.load %arg5[%c2, %c0_33] : memref<36x128xf32, #tpu.memory_space<vmem>>, vector<34x128xf32>
    %c2_34 = arith.constant 2 : index
    %c0_35 = arith.constant 0 : index
    %c0_36 = arith.constant 0 : index
    %26 = vector.load %arg2[%c2_34, %c0_35, %c0_36] : memref<3x128x128xf32, #tpu.memory_space<vmem>>, vector<1x128x128xf32>
    %27 = vector.shape_cast %26 : vector<1x128x128xf32> to vector<128x128xf32>
    %cst_37 = arith.constant dense<0.000000e+00> : vector<34x128xf32>
    %28 = tpu.matmul %25, %27, %cst_37 {dimension_numbers = #tpu.dot_dimension_numbers<[1], [0], [0], [1], [0, 0, 1, 1], [], []>} : vector<34x128xf32>, vector<128x128xf32>, vector<34x128xf32> -> vector<34x128xf32>
    %29 = arith.addf %24, %28 : vector<34x128xf32>
    %cst_38 = arith.constant 0.000000e+00 : f32
    %30 = vector.broadcast %cst_38 : f32 to vector<34x128xf32>
    %31 = arith.maximumf %29, %30 : vector<34x128xf32>
    %32 = vector.extract_strided_slice %31 {offsets = [0, 0], sizes = [16, 128], strides = [1, 1]} : vector<34x128xf32> to vector<16x128xf32>
    %c1_39 = arith.constant 1 : index
    %c0_40 = arith.constant 0 : index
    %33 = vector.load %arg6[%c1_39, %c0_40] : memref<36x128xf32, #tpu.memory_space<vmem>>, vector<16x128xf32>
    tpu.vector_store %arg6[%c1_39, %c0_40], %32 {strides = array<i32>} : memref<36x128xf32, #tpu.memory_space<vmem>>, vector<16x128xf32>,
    %34 = vector.extract_strided_slice %31 {offsets = [18, 0], sizes = [16, 128], strides = [1, 1]} : vector<34x128xf32> to vector<16x128xf32>
    %c19_41 = arith.constant 19 : index
    %c0_42 = arith.constant 0 : index
    %35 = vector.load %arg6[%c19_41, %c0_42] : memref<36x128xf32, #tpu.memory_space<vmem>>, vector<16x128xf32>
    tpu.vector_store %arg6[%c19_41, %c0_42], %34 {strides = array<i32>} : memref<36x128xf32, #tpu.memory_space<vmem>>, vector<16x128xf32>,
    %c0_43 = arith.constant 0 : index
    %c0_44 = arith.constant 0 : index
    %36 = vector.load %arg6[%c0_43, %c0_44] : memref<36x128xf32, #tpu.memory_space<vmem>>, vector<34x128xf32>
    %c0_45 = arith.constant 0 : index
    %c0_46 = arith.constant 0 : index
    %c0_47 = arith.constant 0 : index
    %37 = vector.load %arg3[%c0_45, %c0_46, %c0_47] : memref<3x128x128xf32, #tpu.memory_space<vmem>>, vector<1x128x128xf32>
    %38 = vector.shape_cast %37 : vector<1x128x128xf32> to vector<128x128xf32>
    %cst_48 = arith.constant dense<0.000000e+00> : vector<34x128xf32>
    %39 = tpu.matmul %36, %38, %cst_48 {dimension_numbers = #tpu.dot_dimension_numbers<[1], [0], [0], [1], [0, 0, 1, 1], [], []>} : vector<34x128xf32>, vector<128x128xf32>, vector<34x128xf32> -> vector<34x128xf32>
    %c1_49 = arith.constant 1 : index
    %c0_50 = arith.constant 0 : index
    %40 = vector.load %arg6[%c1_49, %c0_50] : memref<36x128xf32, #tpu.memory_space<vmem>>, vector<34x128xf32>
    %c1_51 = arith.constant 1 : index
    %c0_52 = arith.constant 0 : index
    %c0_53 = arith.constant 0 : index
    %41 = vector.load %arg3[%c1_51, %c0_52, %c0_53] : memref<3x128x128xf32, #tpu.memory_space<vmem>>, vector<1x128x128xf32>
    %42 = vector.shape_cast %41 : vector<1x128x128xf32> to vector<128x128xf32>
    %cst_54 = arith.constant dense<0.000000e+00> : vector<34x128xf32>
    %43 = tpu.matmul %40, %42, %cst_54 {dimension_numbers = #tpu.dot_dimension_numbers<[1], [0], [0], [1], [0, 0, 1, 1], [], []>} : vector<34x128xf32>, vector<128x128xf32>, vector<34x128xf32> -> vector<34x128xf32>
    %44 = arith.addf %39, %43 : vector<34x128xf32>
    %c2_55 = arith.constant 2 : index
    %c0_56 = arith.constant 0 : index
    %45 = vector.load %arg6[%c2_55, %c0_56] : memref<36x128xf32, #tpu.memory_space<vmem>>, vector<34x128xf32>
    %c2_57 = arith.constant 2 : index
    %c0_58 = arith.constant 0 : index
    %c0_59 = arith.constant 0 : index
    %46 = vector.load %arg3[%c2_57, %c0_58, %c0_59] : memref<3x128x128xf32, #tpu.memory_space<vmem>>, vector<1x128x128xf32>
    %47 = vector.shape_cast %46 : vector<1x128x128xf32> to vector<128x128xf32>
    %cst_60 = arith.constant dense<0.000000e+00> : vector<34x128xf32>
    %48 = tpu.matmul %45, %47, %cst_60 {dimension_numbers = #tpu.dot_dimension_numbers<[1], [0], [0], [1], [0, 0, 1, 1], [], []>} : vector<34x128xf32>, vector<128x128xf32>, vector<34x128xf32> -> vector<34x128xf32>
    %49 = arith.addf %44, %48 : vector<34x128xf32>
    %50 = vector.extract_strided_slice %49 {offsets = [0, 0], sizes = [16, 128], strides = [1, 1]} : vector<34x128xf32> to vector<16x128xf32>
    %c0_61 = arith.constant 0 : index
    %c0_62 = arith.constant 0 : index
    %c0_63 = arith.constant 0 : index
    %51 = vector.load %arg4[%c0_61, %c0_62, %c0_63] : memref<2x16x128xf32, #tpu.memory_space<vmem>>, vector<1x16x128xf32>
    %52 = vector.shape_cast %51 : vector<1x16x128xf32> to vector<16x128xf32>
    %53 = vector.shape_cast %50 : vector<16x128xf32> to vector<1x16x128xf32>
    tpu.vector_store %arg4[%c0_61, %c0_62, %c0_63], %53 {strides = array<i32>} : memref<2x16x128xf32, #tpu.memory_space<vmem>>, vector<1x16x128xf32>,
    %54 = vector.extract_strided_slice %49 {offsets = [18, 0], sizes = [16, 128], strides = [1, 1]} : vector<34x128xf32> to vector<16x128xf32>
    %c1_64 = arith.constant 1 : index
    %c0_65 = arith.constant 0 : index
    %c0_66 = arith.constant 0 : index
    %55 = vector.load %arg4[%c1_64, %c0_65, %c0_66] : memref<2x16x128xf32, #tpu.memory_space<vmem>>, vector<1x16x128xf32>
    %56 = vector.shape_cast %55 : vector<1x16x128xf32> to vector<16x128xf32>
    %57 = vector.shape_cast %54 : vector<16x128xf32> to vector<1x16x128xf32>
    tpu.vector_store %arg4[%c1_64, %c0_65, %c0_66], %57 {strides = array<i32>} : memref<2x16x128xf32, #tpu.memory_space<vmem>>, vector<1x16x128xf32>,
    return
  }
  func.func @transform_0(%arg0: i32) -> (i32, i32, i32) {
    %c0_i32 = arith.constant 0 : i32
    %c0_i32_0 = arith.constant 0 : i32
    %c0_i32_1 = arith.constant 0 : i32
    return %arg0, %c0_i32, %c0_i32_0 : i32, i32, i32
  }
  func.func @transform_1(%arg0: i32) -> (i32, i32, i32) {
    %c0_i32 = arith.constant 0 : i32
    %c0_i32_0 = arith.constant 0 : i32
    %c0_i32_1 = arith.constant 0 : i32
    %c0_i32_2 = arith.constant 0 : i32
    return %c0_i32, %c0_i32_0, %c0_i32_1 : i32, i32, i32
  }
  func.func @transform_2(%arg0: i32) -> (i32, i32, i32) {
    %c0_i32 = arith.constant 0 : i32
    %c0_i32_0 = arith.constant 0 : i32
    %c0_i32_1 = arith.constant 0 : i32
    %c0_i32_2 = arith.constant 0 : i32
    return %c0_i32, %c0_i32_0, %c0_i32_1 : i32, i32, i32
  }
  func.func @transform_3(%arg0: i32) -> (i32, i32, i32) {
    %c0_i32 = arith.constant 0 : i32
    %c0_i32_0 = arith.constant 0 : i32
    %c0_i32_1 = arith.constant 0 : i32
    return %arg0, %c0_i32, %c0_i32_0 : i32, i32, i32
  }
}

</mosaic_0001>

<bundles_post_ra>
// kernel: tpu_custom_call.1
= control target key start
LH: loop header
LB: loop body
LE: loop exit
PB: predicated region body
PF: predicated region fallthrough
CT: control target
= control target key end

     0   :  { %8 = vsyncpa [#allocation5], 0  ;;  %s2298_s0 = inlined_call_operand.hbm [shape: f32[4,16,128], index: 0, kind: input, shape index: {}]   ;;  %s2299_s1 = inlined_call_operand.hbm [shape: f32[3,128,128], index: 1, kind: input, shape index: {}]   ;;  %s2300_s2 = inlined_call_operand.hbm [shape: f32[3,128,128], index: 2, kind: input, shape index: {}]   ;;  %s2301_s3 = inlined_call_operand.hbm [shape: f32[4,16,128], index: 3, kind: output, shape index: {}]  }
   0x1   :  { %10 = vsyncpa [#allocation5 + $0x1], 0 }
   0x2   :  { %11 = vsyncpa [#allocation8], 0 }
   0x3   :  { %12 = vsyncpa [#allocation6], 0 }
   0x4   :  { %14 = vsyncpa [#allocation6 + $0x1], 0  ;;  %s1925_s12 = smov 0   ;;  %s1927_s13 = smov 0  }
   0x5   :  { %s1929_s14 = smov 0   ;;  %s1931_s15 = smov 0  }
   0x6 LB: > { %s1946_s16 = sadd.s32 4294967295, %s1892_s15   ;;  %s1041_s17 = sadd.s32 4294967294, %s1892_s15   ;;  %s1892_s15 = sphi %s1931_s15, %s2321_s15   ;;  %s1888_s14 = sphi %s1929_s14, %s2320_s14   ;;  %s1884_s13 = sphi %s1927_s13, %s2319_s13   ;;  %s1880_s12 = sphi %s1925_s12, %s2318_s12  }
   0x7   : > { %p40_p0 = scmp.ne.s32.totalorder %s1884_s13, %s1880_s12  ;;  %p2302_p1 = scmp.eq.s32.totalorder %s1946_s16, 0 }
   0x8   : > { %p112_p3 = scmp.eq.s32.totalorder %s1041_s17, 1  ;;  %p1042_p5 = scmp.ge.s32.totalorder %s1892_s15, 1 }
   0x9   : > { %p1955_p4 = por %p2302_p1, %p40_p0  ;;  %p119_p7 = scmp.lt.s32.totalorder %s1892_s15, 3 }
   0xa   : > { %p1960_p6 = por %p112_p3, %p40_p0  ;;  %s1894_s21 = smov [#allocation7]  }
   0xb   : > { %s2305_s18 = scalar_select %p1955_p4, 1, 0 }
   0xc   : > { %s2306_s19 = scalar_select %p1960_p6, 1, 0 }
   0xd   : > { %p1965_p8 = pnand %p1042_p5, %p119_p7  ;;  %s131_s22 = sshll.u32 %s1894_s21, 4  ;;  %s1969_s22 = int_to_ptr.vmem [resolvable:$true] %s131_s22 }
   0xe   : > { %s1895_s24 = smov [#allocation9]   ;;  %s1736_s28 = scalar_lea.hbm %s2299_s1, 6144 }
   0xf   : > { %p1674_p9 = pneg %p1965_p8  ;;  %s144_s25 = sshll.u32 %s1895_s24, 4  ;;  %s1980_s25 = int_to_ptr.vmem [resolvable:$true] %s144_s25 }
  0x10   : > { %p1737_p12 = scmp.ne.s32.totalorder %s2299_s1, %s1736_s28  ;;  %p1743_p5 = scmp.lt.u32.totalorder %s1736_s28, %s2299_s1 }
  0x11   : > { %p1976_p11 = pnand %p1674_p9, %p2302_p1 }
  0x13   : > { %p1738_p13 = pneg %p1976_p11 }
  0x15   : > { %p1739_p0 = pnand %p1738_p13, %p1737_p12 }
  0x17   : > { %p1740_p3 = pneg %p1739_p0 }
  0x19   : > { %p1745_p7 = pnand %p1743_p5, %p1740_p3 }
  0x1b   : > { %1748 = shalt.err (!%p1745_p7)
}
  0x1c   : > { %s1749_s6 = scalar_lea.vmem %s1969_s22, 6144  ;;  %p1757_p2 = scmp.lt.s32.totalorder %s1969_s22, %s1969_s22 }
  0x1d   : > { %p1750_p9 = scmp.ne.s32.totalorder %s1969_s22, %s1749_s6  ;;  %p1758_p12 = scmp.lt.s32.totalorder %s1749_s6, %s1749_s6 }
  0x1f   : > { %p1752_p10 = pnand %p1750_p9, %p1738_p13  ;;  %p1759_p0 = por %p1758_p12, %p1757_p2 }
  0x21   : > { %p1753_p1 = pneg %p1752_p10 }
  0x23   : > { %p1760_p6 = pnand %p1759_p0, %p1753_p1 }
  0x25   : > { %1763 = shalt.err (!%p1760_p6)
}
  0x26   : > { %s1896_s7 = smov 128   ;;  %s1897_s8 = smov 8  }
  0x27   : > { %1677 = dma.hbm_to_vmem [thread:$0]  (!%p1976_p11), %s2299_s1, 6144, %s1969_s22, [#allocation8], %s1896_s7, %s1896_s7, %s1897_s8  }
  0x28   : > { %s1764_s21 = scalar_lea.hbm %s2300_s2, 6144 }
  0x29   : > { %p1765_p1 = scmp.ne.s32.totalorder %s2300_s2, %s1764_s21  ;;  %p1771_p10 = scmp.lt.u32.totalorder %s1764_s21, %s2300_s2 }
  0x2b   : > { %p1767_p2 = pnand %p1765_p1, %p1738_p13 }
  0x2d   : > { %p1768_p6 = pneg %p1767_p2 }
  0x2f   : > { %p1773_p3 = pnand %p1771_p10, %p1768_p6 }
  0x31   : > { %1776 = shalt.err (!%p1773_p3)
}
  0x32   : > { %s1777_s22 = scalar_lea.vmem %s1980_s25, 6144  ;;  %p1785_p12 = scmp.lt.s32.totalorder %s1980_s25, %s1980_s25 }
  0x33   : > { %p1778_p5 = scmp.ne.s32.totalorder %s1980_s25, %s1777_s22  ;;  %p1786_p0 = scmp.lt.s32.totalorder %s1777_s22, %s1777_s22 }
  0x35   : > { %p1780_p7 = pnand %p1778_p5, %p1738_p13  ;;  %p1787_p1 = por %p1786_p0, %p1785_p12 }
  0x37   : > { %p1781_p9 = pneg %p1780_p7 }
  0x39   : > { %p1788_p2 = pnand %p1787_p1, %p1781_p9 }
  0x3b   : > { %1791 = shalt.err (!%p1788_p2)
}
  0x3c   : > { %1680 = dma.hbm_to_vmem [thread:$0]  (!%p1976_p11), %s2300_s2, 6144, %s1980_s25, [#allocation8], %s1896_s7, %s1896_s7, %s1897_s8  }
  0x3d   : > { %s2041_s23 = sadd.s32 1, %s1892_s15   ;;  %s27_s4 = sadd.s32 1, %s1888_s14 }
  0x3e   : > { %s24_s5 = ssub.s32 %s1892_s15, %s2041_s23  ;;  %p34_p13 = scmp.ne.s32.totalorder %s1888_s14, %s1884_s13 }
  0x3f   : > { %p25_p6 = scmp.eq.s32.totalorder %s24_s5, 0  ;;  %p35_p10 = scmp.eq.s32.totalorder %s1892_s15, 0 }
  0x40   : > { %p2309_p3 = scmp.eq.s32.totalorder %s1946_s16, 1  ;;  %p1691_p7 = scmp.lt.s32.totalorder %s1892_s15, 2 }
  0x41   : > { %s2057_s9 = scalar_select %p25_p6, %s1888_s14, %s27_s4  }
  0x42   : > { %p2051_p5 = por %p2309_p3, %p34_p13  ;;  %p36_p9 = por %p35_p10, %p34_p13 }
  0x43   : > { %s158_s10 = sand.u32 1, %s1888_s14   ;;  %s1067_s25 = sshll.u32 %s1892_s15, 9 }
  0x44   : > { %s2310_s6 = scalar_select %p2051_p5, 1, 0 }
  0x45   : > { %s1046_s11 = sshll.u32 %s158_s10, 5  ;;  %s2064_s24 = scalar_lea.hbm %s2298_s0, %s1067_s25 }
  0x46   : > { %s162_s26 = scalar_lea.vmem [#allocation4], %s1046_s11  ;;  %p2068_p11 = pnand %p1691_p7, %p36_p9 }
  0x47   : > { %s170_s27 = sshll.u32 %s162_s26, 4  ;;  %s2072_s22 = scalar_lea.sflag [#allocation5], %s158_s10  ;;  %s2066_s27 = int_to_ptr.vmem [resolvable:$true] %s170_s27 }
  0x48   : > { %s1792_s29 = scalar_lea.hbm %s2064_s24, 512  ;;  %p1794_p0 = pneg %p2068_p11 }
  0x49   : > { %p1793_p12 = scmp.ne.s32.totalorder %s2064_s24, %s1792_s29  ;;  %s1797_s5 = scalar_lea.hbm %s2298_s0, 1024 }
  0x4a   : > { %p1798_p13 = scmp.lt.u32.totalorder %s2064_s24, %s2298_s0  ;;  %p1799_p6 = scmp.lt.u32.totalorder %s1797_s5, %s1792_s29 }
  0x4b   : > { %p1795_p1 = pnand %p1794_p0, %p1793_p12  ;;  %p1801_p3 = scmp.lt.u32.totalorder %s1792_s29, %s2064_s24 }
  0x4c   : > { %p1800_p10 = por %p1799_p6, %p1798_p13 }
  0x4d   : > { %p1796_p2 = pneg %p1795_p1 }
  0x4e   : > { %p1802_p7 = por %p1801_p3, %p1800_p10 }
  0x50   : > { %p1803_p9 = pnand %p1802_p7, %p1796_p2 }
  0x52   : > { %1806 = shalt.err (!%p1803_p9)
}
  0x53   : > { %s1807_s10 = scalar_lea.vmem %s2066_s27, 512  ;;  %s1898_s17 = smov [#allocation4]  }
  0x54   : > { %p1808_p12 = scmp.ne.s32.totalorder %s2066_s27, %s1807_s10  ;;  %s1812_s21 = sshll.u32 %s1898_s17, 4  ;;  %s1813_s21 = int_to_ptr.vmem [resolvable:$false] %s1812_s21 }
  0x55   : > { %s1814_s26 = scalar_lea.vmem %s1813_s21, 1024  ;;  %p1815_p4 = scmp.lt.s32.totalorder %s2066_s27, %s1813_s21 }
  0x56   : > { %p1810_p1 = pnand %p1808_p12, %p1794_p0  ;;  %p1816_p13 = scmp.lt.s32.totalorder %s1814_s26, %s1807_s10 }
  0x58   : > { %p1811_p5 = pneg %p1810_p1  ;;  %p1817_p6 = por %p1816_p13, %p1815_p4 }
  0x5a   : > { %p1818_p10 = pnand %p1817_p6, %p1811_p5 }
  0x5c   : > { %1821 = shalt.err (!%p1818_p10)
}
  0x5d   : > { %1684 = dma.hbm_to_vmem [thread:$0]  (!%p2068_p11), %s2064_s24, 512, %s2066_s27, %s2072_s22, %s1896_s7, %s1896_s7, %s1897_s8  }
  0x5e   : > { %182 = sbr.rel (%p1965_p8) target bundleno = 724 (0x2d4), region = 32  ;;  %s2106_s29 = sand.u32 (!%p1965_p8), 1, %s1884_s13  }
  0x5f   : > { %s1051_s30 = sshll.u32 (!%p1965_p8), %s2106_s29, 5  ;;  %s185_s4 = scalar_lea.sflag (!%p1965_p8), [#allocation5], %s2106_s29 }
  0x60   : > { %s2112_s28 = scalar_lea.vmem (!%p1965_p8), [#allocation4], %s1051_s30  ;;  %p2312_p4 = scmp.ne.s32.totalorder (!%p1965_p8), %s2305_s18, 0 }
  0x65   : > { %1867 = dma.done.wait (%p2312_p4), %s185_s4, 512  }
  0x66   : > { %1869 = vsyncadd (%p2312_p4), %s185_s4, 4294966784  ;;  %p2313_p5 = scmp.eq.s32.totalorder %s1946_s16, 0 }
  0x68   : > { %1871 = dma.done.wait (%p2313_p5), [#allocation8], 12288   ;;  %p2314_p8 = pmov %p2313_p5 }
  0x69   : > { %v1899_v0 = vmov 0.0|0.0   ;;  %vm1900_vm0 = vmmov 0   ;;  %v1901_v1 = vmov 0.0   ;;  %v265_v2 = vld [vmem:[#allocation7 + $0x80] sm:$0xff]  ;;  %v266_v3 = vld [vmem:[#allocation7 + $0x88] sm:$0xff]  ;;  %v267_v4 = vld [vmem:[#allocation7 + $0x90] sm:$0xff] }
  0x6a   : > { %1873 = vsyncadd (%p2314_p8), [#allocation8], 4294955008  ;;  %1478 = vmatprep.subr.bf16.mxu0 %v1899_v0  ;;  %1228 = vmatprep.mubr.msk.f32.mxu0 %vm1900_vm0, %v1901_v1  ;;  %221 = vst [vmem:[#allocation2] sm:$0x1] %v1901_v1  ;;  %v1479_v5 = vpack.c.bf16 %v266_v3, %v265_v2  ;;  %v268_v6 = vld [vmem:[#allocation7 + $0x98] sm:$0xff]  ;;  %v269_v8 = vld [vmem:[#allocation7 + $0xa0] sm:$0xff] }
  0x6b   : > { %226 = vst [vmem:[#allocation2 + $0x11] sm:$0x1] %v1901_v1  ;;  %227 = vst [vmem:[#allocation3] sm:$0x1] %v1901_v1  ;;  %1550 = vmatprep.subr.bf16.mxu1 %v1899_v0  ;;  %1369 = vmatprep.mubr.msk.f32.mxu1 %vm1900_vm0, %v1901_v1  ;;  %v1482_v7 = vpack.c.bf16 %v268_v6, %v267_v4  ;;  %v270_v9 = vld [vmem:[#allocation7 + $0xa8] sm:$0xff]  ;;  %v222_v10 = vld [vmem:[%s2112_s28] sm:$0xff] }
  0x6c   : > { %228 = vst [vmem:[#allocation3 + $0x11] sm:$0x1] %v1901_v1  ;;  %229 = vst [vmem:[#allocation2 + $0x12] sm:$0x1] %v1901_v1  ;;  %1480 = vmatpush3.bf16.msra.mxu0 %v1479_v5  ;;  %v1485_v11 = vpack.c.bf16 %v270_v9, %v269_v8  ;;  %v271_v12 = vld [vmem:[#allocation7 + $0xb0] sm:$0xff]  ;;  %v272_v13 = vld [vmem:[#allocation7 + $0xb8] sm:$0xff] }
  0x6d   : > { %235 = vst [vmem:[#allocation2 + $0x23] sm:$0x1] %v1901_v1  ;;  %236 = vst [vmem:[#allocation3 + $0x12] sm:$0x1] %v1901_v1  ;;  %1481 = vmatprep.subr.bf16.mxu0 %v1899_v0  ;;  %v2140_v14 = vld [vmem:[%s2112_s28 + $0x8] sm:$0xff]  ;;  %v1055_v15 = vld [vmem:[%s2112_s28 + $0x10] sm:$0xff]  ;;  %v1488_v17 = vpack.c.bf16 %v272_v13, %v271_v12 }
  0x6e   : > { %237 = vst [vmem:[#allocation3 + $0x23] sm:$0x1] %v1901_v1  ;;  %224 = vst [vmem:[#allocation2 + $0x1] sm:$0xff] %v222_v10  ;;  %v1056_v16 = vld [vmem:[%s2112_s28 + $0x18] sm:$0xff]  ;;  %v273_v18 = vld [vmem:[#allocation7 + $0xc0] sm:$0xff]  ;;  %s218_s18 = scalar_lea.vmem [#allocation10], %s1051_s30 }
  0x6f   : > { %225 = vst [vmem:[#allocation2 + $0x9] sm:$0xff] %v2140_v14  ;;  %233 = vst [vmem:[#allocation2 + $0x13] sm:$0xff] %v1055_v15  ;;  %v274_v19 = vld [vmem:[#allocation7 + $0xc8] sm:$0xff]  ;;  %v275_v21 = vld [vmem:[#allocation7 + $0xd0] sm:$0xff]  ;;  %s949_s20 = sshll.u32 %s218_s18, 4  ;;  %s1069_s7 = sshll.u32 %s1946_s16, 9  ;;  %s2249_s20 = int_to_ptr.vmem [resolvable:$true] %s949_s20 }
  0x70   : > { %1483 = vmatpush3.bf16.msra.mxu0 %v1482_v7  ;;  %234 = vst [vmem:[#allocation2 + $0x1b] sm:$0xff] %v1056_v16  ;;  %v1491_v20 = vpack.c.bf16 %v274_v19, %v273_v18  ;;  %v276_v22 = vld [vmem:[#allocation7 + $0xd8] sm:$0xff]  ;;  %v277_v24 = vld [vmem:[#allocation7 + $0xe0] sm:$0xff]  ;;  %v278_v25 = vld [vmem:[#allocation7 + $0xe8] sm:$0xff]  ;;  %s2254_s27 = scalar_lea.hbm %s2301_s3, %s1069_s7  ;;  %s935_s22 = scalar_lea.sflag [#allocation6], %s2106_s29 }
  0x71   : > { %1484 = vmatprep.subr.bf16.mxu0 %v1899_v0  ;;  %v1494_v23 = vpack.c.bf16 %v276_v22, %v275_v21  ;;  %v615_v26 = vld [vmem:[#allocation9 + $0x80] sm:$0xff]  ;;  %v616_v27 = vld [vmem:[#allocation9 + $0x88] sm:$0xff]  ;;  %v617_v28 = vld [vmem:[#allocation9 + $0x90] sm:$0xff]  ;;  %v1497_v30 = vpack.c.bf16 %v278_v25, %v277_v24  ;;  %s1822_s5 = scalar_lea.vmem %s2249_s20, 512  ;;  %p2315_p0 = scmp.ne.s32.totalorder %s2310_s6, 0 }
  0x72   : > { %v618_v29 = vld [vmem:[#allocation9 + $0x98] sm:$0xff]  ;;  %v1551_v31 = vpack.c.bf16 %v616_v27, %v615_v26  ;;  %v279_v32 = vld [vmem:[#allocation7 + $0xf0] sm:$0xff]  ;;  %v619_v35 = vld [vmem:[#allocation9 + $0xa0] sm:$0xff]  ;;  %p1823_p11 = scmp.ne.s32.totalorder %s2249_s20, %s1822_s5  ;;  %s1902_s16 = smov [#allocation10]  }
  0x73   : > { %v280_v33 = vld [vmem:[#allocation7 + $0xf8] sm:$0xff]  ;;  %v1554_v34 = vpack.c.bf16 %v618_v29, %v617_v28  ;;  %v620_v36 = vld [vmem:[#allocation9 + $0xa8] sm:$0xff]  ;;  %v243_v38 = vld [vmem:[#allocation7] sm:$0xff]  ;;  %s1826_s11 = sshll.u32 %s1902_s16, 4  ;;  %s1827_s11 = int_to_ptr.vmem [resolvable:$false] %s1826_s11 }
  0x74   : > { %1486 = vmatpush3.bf16.msra.mxu0 %v1485_v11  ;;  %1552 = vmatpush3.bf16.msra.mxu1 %v1551_v31  ;;  %v1500_v37 = vpack.c.bf16 %v280_v33, %v279_v32  ;;  %v244_v39 = vld [vmem:[#allocation7 + $0x8] sm:$0xff]  ;;  %v1557_v40 = vpack.c.bf16 %v620_v36, %v619_v35  ;;  %v621_v41 = vld [vmem:[#allocation9 + $0xb0] sm:$0xff]  ;;  %v622_v42 = vld [vmem:[#allocation9 + $0xb8] sm:$0xff]  ;;  %p1824_p2 = pnand %p1823_p11, %p2315_p0  ;;  %s1828_s25 = scalar_lea.vmem %s1827_s11, 1024 }
  0x75   : > { %1487 = vmatprep.subr.bf16.mxu0 %v1899_v0  ;;  %1553 = vmatprep.subr.bf16.mxu1 %v1899_v0  ;;  %v1503_v43 = vpack.c.bf16 %v244_v39, %v243_v38  ;;  %v245_v44 = vld [vmem:[#allocation7 + $0x10] sm:$0xff]  ;;  %v246_v45 = vld [vmem:[#allocation7 + $0x18] sm:$0xff]  ;;  %v1560_v46 = vpack.c.bf16 %v622_v42, %v621_v41  ;;  %v623_v47 = vld [vmem:[#allocation9 + $0xc0] sm:$0xff]  ;;  %p1829_p7 = scmp.lt.s32.totalorder %s2249_s20, %s1827_s11  ;;  %p1830_p9 = scmp.lt.s32.totalorder %s1828_s25, %s1822_s5 }
  0x76   : > { %v624_v48 = vld [vmem:[#allocation9 + $0xc8] sm:$0xff]  ;;  %v1506_v49 = vpack.c.bf16 %v246_v45, %v245_v44  ;;  %v247_v50 = vld [vmem:[#allocation7 + $0x20] sm:$0xff]  ;;  %v625_v53 = vld [vmem:[#allocation9 + $0xd0] sm:$0xff]  ;;  %p1825_p3 = pneg %p1824_p2 }
  0x77   : > { %v248_v51 = vld [vmem:[#allocation7 + $0x28] sm:$0xff]  ;;  %v1563_v52 = vpack.c.bf16 %v624_v48, %v623_v47  ;;  %v626_v54 = vld [vmem:[#allocation9 + $0xd8] sm:$0xff]  ;;  %v249_v57 = vld [vmem:[#allocation7 + $0x30] sm:$0xff]  ;;  %p1831_p12 = por %p1830_p9, %p1829_p7 }
  0x78   : > { %1489 = vmatpush3.bf16.msra.mxu0 %v1488_v17  ;;  %1555 = vmatpush3.bf16.msra.mxu1 %v1554_v34  ;;  %v1509_v55 = vpack.c.bf16 %v248_v51, %v247_v50  ;;  %v261_v56 = vld [vmem:[#allocation2 + $0x11] sm:$0xff]  ;;  %v250_v58 = vld [vmem:[#allocation7 + $0x38] sm:$0xff]  ;;  %v1566_v59 = vpack.c.bf16 %v626_v54, %v625_v53  ;;  %v262_v61 = vld [vmem:[#allocation2 + $0x19] sm:$0xff] }
  0x79   : > { %1490 = vmatprep.subr.bf16.mxu0 %v1899_v0  ;;  %1556 = vmatprep.subr.bf16.mxu1 %v1899_v0  ;;  %v1512_v60 = vpack.c.bf16 %v250_v58, %v249_v57  ;;  %v251_v62 = vld [vmem:[#allocation7 + $0x40] sm:$0xff]  ;;  %v252_v63 = vld [vmem:[#allocation7 + $0x48] sm:$0xff]  ;;  %v263_v3 = vld [vmem:[#allocation2 + $0x21] sm:$0x3]  ;;  %p1832_p1 = pnand %p1831_p12, %p1825_p3 }
  0x7a   : > { %v1515_v2 = vpack.c.bf16 %v252_v63, %v251_v62  ;;  %v253_v4 = vld [vmem:[#allocation7 + $0x50] sm:$0xff]  ;;  %v254_v5 = vld [vmem:[#allocation7 + $0x58] sm:$0xff]  ;;  %v255_v7 = vld [vmem:[#allocation7 + $0x60] sm:$0xff] }
  0x7b   : > { %v1518_v6 = vpack.c.bf16 %v254_v5, %v253_v4  ;;  %v256_v8 = vld [vmem:[#allocation7 + $0x68] sm:$0xff]  ;;  %v258_v11 = vld [vmem:[#allocation7 + $0x78] sm:$0xff]  ;;  %v467_v13 = vld [vmem:[#allocation7 + $0x100] sm:$0xff] }
  0x7c   : > { %1492 = vmatpush3.bf16.msra.mxu0 %v1491_v20  ;;  %1558 = vmatpush3.bf16.msra.mxu1 %v1557_v40  ;;  %v1521_v9 = vpack.c.bf16 %v256_v8, %v255_v7  ;;  %v238_v15 = vld [vmem:[#allocation2] sm:$0xff]  ;;  %v470_v18 = vld [vmem:[#allocation7 + $0x118] sm:$0xff]  ;;  %v471_v21 = vld [vmem:[#allocation7 + $0x120] sm:$0xff] }
  0x7d   : > { %1493 = vmatprep.subr.bf16.mxu0 %v1899_v0  ;;  %1559 = vmatprep.subr.bf16.mxu1 %v1899_v0  ;;  %v469_v17 = vld [vmem:[#allocation7 + $0x110] sm:$0xff]  ;;  %v239_v20 = vld [vmem:[#allocation2 + $0x8] sm:$0xff]  ;;  %v472_v22 = vld [vmem:[#allocation7 + $0x128] sm:$0xff] }
  0x7e   : > { %v1530_v19 = vpack.c.bf16 %v470_v18, %v469_v17  ;;  %v240_v24 = vld [vmem:[#allocation2 + $0x10] sm:$0xff]  ;;  %v473_v25 = vld [vmem:[#allocation7 + $0x130] sm:$0xff]  ;;  %v474_v26 = vld [vmem:[#allocation7 + $0x138] sm:$0xff] }
  0x7f   : > { %v1536_v27 = vpack.c.bf16 %v474_v26, %v473_v25  ;;  %v241_v28 = vld [vmem:[#allocation2 + $0x18] sm:$0xff]  ;;  %v475_v29 = vld [vmem:[#allocation7 + $0x140] sm:$0xff]  ;;  %v242_v32 = vld [vmem:[#allocation2 + $0x20] sm:$0x3] }
  0x80   : > { %1495 = vmatpush3.bf16.msra.mxu0 %v1494_v23  ;;  %1561 = vmatpush3.bf16.msra.mxu1 %v1560_v46  ;;  %v1533_v23 = vpack.c.bf16 %v472_v22, %v471_v21  ;;  %v477_v33 = vld [vmem:[#allocation7 + $0x150] sm:$0xff]  ;;  %v478_v34 = vld [vmem:[#allocation7 + $0x158] sm:$0xff]  ;;  %v479_v36 = vld [vmem:[#allocation7 + $0x160] sm:$0xff] }
  0x81   : > { %1496 = vmatprep.subr.bf16.mxu0 %v1899_v0  ;;  %1562 = vmatprep.subr.bf16.mxu1 %v1899_v0  ;;  %v1542_v35 = vpack.c.bf16 %v478_v34, %v477_v33  ;;  %v481_v39 = vld [vmem:[#allocation7 + $0x170] sm:$0xff]  ;;  %v482_v40 = vld [vmem:[#allocation7 + $0x178] sm:$0xff]  ;;  %v463_v44 = vld [vmem:[#allocation2 + $0x12] sm:$0xff] }
  0x82   : > { %v1548_v41 = vpack.c.bf16 %v482_v40, %v481_v39  ;;  %v461_v42 = vld [vmem:[#allocation2 + $0x2] sm:$0xff]  ;;  %v464_v45 = vld [vmem:[#allocation2 + $0x1a] sm:$0xff]  ;;  %v627_v47 = vld [vmem:[#allocation9 + $0xe0] sm:$0xff] }
  0x83   : > { %v465_v46 = vld [vmem:[#allocation2 + $0x22] sm:$0x3]  ;;  %v628_v48 = vld [vmem:[#allocation9 + $0xe8] sm:$0xff]  ;;  %v630_v51 = vld [vmem:[#allocation9 + $0xf8] sm:$0xff] }
  0x84   : > { %1498 = vmatpush3.bf16.msra.mxu0 %v1497_v30  ;;  %1564 = vmatpush3.bf16.msra.mxu1 %v1563_v52  ;;  %v476_v30 = vld [vmem:[#allocation7 + $0x148] sm:$0xff]  ;;  %v629_v50 = vld [vmem:[#allocation9 + $0xf0] sm:$0xff]  ;;  %v593_v53 = vld [vmem:[#allocation9] sm:$0xff] }
  0x85   : > { %1499 = vmatprep.subr.bf16.mxu0 %v1899_v0  ;;  %1565 = vmatprep.subr.bf16.mxu1 %v1899_v0  ;;  %v1539_v31 = vpack.c.bf16 %v476_v30, %v475_v29  ;;  %v1572_v52 = vpack.c.bf16 %v630_v51, %v629_v50  ;;  %v594_v54 = vld [vmem:[#allocation9 + $0x8] sm:$0xff]  ;;  %v603_v21 = vld [vmem:[#allocation9 + $0x50] sm:$0xff]  ;;  %v604_v22 = vld [vmem:[#allocation9 + $0x58] sm:$0xff] }
  0x86   : > { %v598_v4 = vld [vmem:[#allocation9 + $0x28] sm:$0xff]  ;;  %v605_v25 = vld [vmem:[#allocation9 + $0x60] sm:$0xff]  ;;  %v608_v29 = vld [vmem:[#allocation9 + $0x78] sm:$0xff] }
  0x87   : > { %v606_v26 = vld [vmem:[#allocation9 + $0x68] sm:$0xff]  ;;  %v821_v39 = vld [vmem:[#allocation9 + $0x120] sm:$0xff]  ;;  %v827_v51 = vld [vmem:[#allocation9 + $0x150] sm:$0xff] }
  0x88   : > { %1501 = vmatpush3.bf16.msra.mxu0 %v1500_v37  ;;  %1567 = vmatpush3.bf16.msra.mxu1 %v1566_v59  ;;  %v480_v37 = vld [vmem:[#allocation7 + $0x168] sm:$0xff]  ;;  %v595_v59 = vld [vmem:[#allocation9 + $0x10] sm:$0xff] }
  0x89   : > { %1502 = vmatprep.subr.bf16.mxu0 %v1899_v0  ;;  %1568 = vmatprep.subr.bf16.mxu1 %v1899_v0  ;;  %v1545_v38 = vpack.c.bf16 %v480_v37, %v479_v36  ;;  %v818_v33 = vld [vmem:[#allocation9 + $0x108] sm:$0xff]  ;;  %v820_v36 = vld [vmem:[#allocation9 + $0x118] sm:$0xff] }
  0x8a   : > { %v822_v40 = vld [vmem:[#allocation9 + $0x128] sm:$0xff] }
  0x8b   : > { %1229 = vmatmul.mubr.f32.vlgmr.msra.gmra.mrb[0].mxu0 %v222_v10  ;;  %v257_v10 = vld [vmem:[#allocation7 + $0x70] sm:$0xff] }
  0x8c   : > { %1504 = vmatpush3.bf16.msra.mxu0 %v1503_v43  ;;  %1231 = vmatprep.mubr.msk.f32.mxu0 %vm1900_vm0, %v1901_v1  ;;  %v1524_v12 = vpack.c.bf16 %v258_v11, %v257_v10  ;;  %v462_v43 = vld [vmem:[#allocation2 + $0xa] sm:$0xff] }
  0x8d   : > { %1505 = vmatprep.subr.bf16.mxu0 %v1899_v0  ;;  %v600_v10 = vld [vmem:[#allocation9 + $0x38] sm:$0xff] }
  0x8f   : > { %1232 = vmatmul.mubr.f32.gmra.mrb[2].mxu0 %v2140_v14  ;;  %v468_v14 = vld [vmem:[#allocation7 + $0x108] sm:$0xff] }
  0x90   : > { %1507 = vmatpush3.bf16.msra.mxu0 %v1506_v49  ;;  %1234 = vmatprep.mubr.msk.f32.mxu0 %vm1900_vm0, %v1901_v1  ;;  %v1527_v16 = vpack.c.bf16 %v468_v14, %v467_v13  ;;  %v1569_v49 = vpack.c.bf16 %v628_v48, %v627_v47  ;;  %v825_v47 = vld [vmem:[#allocation9 + $0x140] sm:$0xff]  ;;  %v826_v48 = vld [vmem:[#allocation9 + $0x148] sm:$0xff] }
  0x91   : > { %1508 = vmatprep.subr.bf16.mxu0 %v1899_v0  ;;  %v1611_v50 = vpack.c.bf16 %v826_v48, %v825_v47 }
  0x92   : > { %1570 = vmatpush3.bf16.msra.mxu1 %v1569_v49 }
  0x93   : > { %1235 = vmatmul.mubr.f32.gmra.mrb[4].mxu0 %v261_v56  ;;  %1571 = vmatprep.subr.bf16.mxu1 %v1899_v0  ;;  %v1575_v56 = vpack.c.bf16 %v594_v54, %v593_v53 }
  0x94   : > { %1510 = vmatpush3.bf16.msra.mxu0 %v1509_v55  ;;  %1237 = vmatprep.mubr.msk.f32.mxu0 %vm1900_vm0, %v1901_v1 }
  0x95   : > { %1511 = vmatprep.subr.bf16.mxu0 %v1899_v0 }
  0x96   : > { %1573 = vmatpush3.bf16.msra.mxu1 %v1572_v52  ;;  %v828_v52 = vld [vmem:[#allocation9 + $0x158] sm:$0xff] }
  0x97   : > { %1238 = vmatmul.mubr.f32.gmra.mrb[6].mxu0 %v262_v61  ;;  %1574 = vmatprep.subr.bf16.mxu1 %v1899_v0  ;;  %v1614_v54 = vpack.c.bf16 %v828_v52, %v827_v51 }
  0x98   : > { %1513 = vmatpush3.bf16.msra.mxu0 %v1512_v60  ;;  %1240 = vmatprep.mubr.msk.f32.mxu0 %vm1900_vm0, %v1901_v1  ;;  %v596_v60 = vld [vmem:[#allocation9 + $0x18] sm:$0xff] }
  0x99   : > { %1514 = vmatprep.subr.bf16.mxu0 %v1899_v0  ;;  %v1578_v62 = vpack.c.bf16 %v596_v60, %v595_v59  ;;  %v832_v59 = vld [vmem:[#allocation9 + $0x178] sm:$0xff] }
  0x9b   : > { %1241 = vmatmul.mubr.f32.gmra.mrb[8].mxu0 %v263_v3  ;;  %v597_v3 = vld [vmem:[#allocation9 + $0x20] sm:$0xff] }
  0x9c   : > { %1516 = vmatpush3.bf16.msra.mxu0 %v1515_v2  ;;  %1275 = vmatprep.mubr.msk.f32.mxu0 %vm1900_vm0, %v1901_v1 }
  0x9d   : > { %1517 = vmatprep.subr.bf16.mxu0 %v1899_v0 }
  0xa0   : > { %1519 = vmatpush3.bf16.msra.mxu0 %v1518_v6  ;;  %v1581_v6 = vpack.c.bf16 %v598_v4, %v597_v3 }
  0xa1   : > { %1520 = vmatprep.subr.bf16.mxu0 %v1899_v0 }
  0xa4   : > { %1522 = vmatpush3.bf16.msra.mxu0 %v1521_v9  ;;  %v599_v9 = vld [vmem:[#allocation9 + $0x30] sm:$0xff] }
  0xa5   : > { %1523 = vmatprep.subr.bf16.mxu0 %v1899_v0 }
  0xa8   : > { %1525 = vmatpush3.bf16.msra.mxu0 %v1524_v12  ;;  %v1584_v12 = vpack.c.bf16 %v600_v10, %v599_v9 }
  0xa9   : > { %1526 = vmatprep.subr.bf16.mxu0 %v1899_v0 }
  0xab   : > { %1276 = vmatmul.mubr.f32.vlgmr.msra.gmra.mrb[0].mxu0 %v238_v15  ;;  %v601_v15 = vld [vmem:[#allocation9 + $0x40] sm:$0xff] }
  0xac   : > { %1528 = vmatpush3.bf16.msra.mxu0 %v1527_v16  ;;  %1278 = vmatprep.mubr.msk.f32.mxu0 %vm1900_vm0, %v1901_v1  ;;  %v602_v16 = vld [vmem:[#allocation9 + $0x48] sm:$0xff] }
  0xad   : > { %1529 = vmatprep.subr.bf16.mxu0 %v1899_v0  ;;  %v1587_v18 = vpack.c.bf16 %v602_v16, %v601_v15 }
  0xaf   : > { %1279 = vmatmul.mubr.f32.gmra.mrb[2].mxu0 %v239_v20 }
  0xb0   : > { %1531 = vmatpush3.bf16.msra.mxu0 %v1530_v19  ;;  %1281 = vmatprep.mubr.msk.f32.mxu0 %vm1900_vm0, %v1901_v1 }
  0xb1   : > { %1532 = vmatprep.subr.bf16.mxu0 %v1899_v0 }
  0xb3   : > { %1282 = vmatmul.mubr.f32.gmra.mrb[4].mxu0 %v240_v24  ;;  %v1590_v24 = vpack.c.bf16 %v604_v22, %v603_v21 }
  0xb4   : > { %1534 = vmatpush3.bf16.msra.mxu0 %v1533_v23  ;;  %1284 = vmatprep.mubr.msk.f32.mxu0 %vm1900_vm0, %v1901_v1 }
  0xb5   : > { %1535 = vmatprep.subr.bf16.mxu0 %v1899_v0 }
  0xb7   : > { %1285 = vmatmul.mubr.f32.gmra.mrb[6].mxu0 %v241_v28  ;;  %v607_v28 = vld [vmem:[#allocation9 + $0x70] sm:$0xff] }
  0xb8   : > { %1537 = vmatpush3.bf16.msra.mxu0 %v1536_v27  ;;  %1287 = vmatprep.mubr.msk.f32.mxu0 %vm1900_vm0, %v1901_v1  ;;  %v1593_v27 = vpack.c.bf16 %v606_v26, %v605_v25 }
  0xb9   : > { %1538 = vmatprep.subr.bf16.mxu0 %v1899_v0 }
  0xbb   : > { %1288 = vmatmul.mubr.f32.gmra.mrb[8].mxu0 %v242_v32  ;;  %v817_v32 = vld [vmem:[#allocation9 + $0x100] sm:$0xff] }
  0xbc   : > { %1540 = vmatpush3.bf16.msra.mxu0 %v1539_v31  ;;  %1322 = vmatprep.mubr.msk.f32.mxu0 %vm1900_vm0, %v1901_v1  ;;  %v1596_v31 = vpack.c.bf16 %v608_v29, %v607_v28  ;;  %v1599_v34 = vpack.c.bf16 %v818_v33, %v817_v32 }
  0xbd   : > { %1541 = vmatprep.subr.bf16.mxu0 %v1899_v0 }
  0xc0   : > { %1543 = vmatpush3.bf16.msra.mxu0 %v1542_v35  ;;  %v819_v35 = vld [vmem:[#allocation9 + $0x110] sm:$0xff] }
  0xc1   : > { %1544 = vmatprep.subr.bf16.mxu0 %v1899_v0 }
  0xc4   : > { %1546 = vmatpush3.bf16.msra.mxu0 %v1545_v38  ;;  %v1602_v38 = vpack.c.bf16 %v820_v36, %v819_v35 }
  0xc5   : > { %1547 = vmatprep.subr.bf16.mxu0 %v1899_v0 }
  0xc8   : > { %1549 = vmatpush3.bf16.msra.mxu0 %v1548_v41 }
  0xcb   : > { %1323 = vmatmul.mubr.f32.vlgmr.msra.gmra.mrb[0].mxu0 %v461_v42  ;;  %v1605_v42 = vpack.c.bf16 %v822_v40, %v821_v39 }
  0xcc   : > { %1325 = vmatprep.mubr.msk.f32.mxu0 %vm1900_vm0, %v1901_v1 }
  0xcf   : > { %1326 = vmatmul.mubr.f32.gmra.mrb[2].mxu0 %v462_v43  ;;  %v823_v43 = vld [vmem:[#allocation9 + $0x130] sm:$0xff] }
  0xd0   : > { %1328 = vmatprep.mubr.msk.f32.mxu0 %vm1900_vm0, %v1901_v1 }
  0xd3   : > { %1329 = vmatmul.mubr.f32.gmra.mrb[4].mxu0 %v463_v44  ;;  %v824_v44 = vld [vmem:[#allocation9 + $0x138] sm:$0xff] }
  0xd4   : > { %1331 = vmatprep.mubr.msk.f32.mxu0 %vm1900_vm0, %v1901_v1 }
  0xd7   : > { %1332 = vmatmul.mubr.f32.gmra.mrb[6].mxu0 %v464_v45 }
  0xd8   : > { %1334 = vmatprep.mubr.msk.f32.mxu0 %vm1900_vm0, %v1901_v1 }
  0xdb   : > { %1335 = vmatmul.mubr.f32.gmra.mrb[8].mxu0 %v465_v46  ;;  %v1608_v46 = vpack.c.bf16 %v824_v44, %v823_v43 }
 0x19e   : > { %v549_v55 = vpop.f32.mrb[0].mxu0 }
 0x19f   : > { %v578_v57 = vmax.f32 %v549_v55, 0.0  ;;  %v1324_v58 = vpop.f32.mrb[1].mxu0  ;;  %v829_v55 = vld [vmem:[#allocation9 + $0x160] sm:$0xff] }
 0x1a0   : > { %v831_v58 = vld [vmem:[#allocation9 + $0x170] sm:$0xff] }
 0x1a1   : > { %583 = vst [vmem:[#allocation3 + $0x1] sm:$0xff] %v578_v57  ;;  %1370 = vmatmul.mubr.f32.vlgmr.msra.gmra.mrb[0].mxu1 %v578_v57  ;;  %v1620_v60 = vpack.c.bf16 %v832_v59, %v831_v58 }
 0x1a2   : > { %v554_v61 = vpop.f32.mrb[2].mxu0  ;;  %1576 = vmatpush3.bf16.msra.mxu1 %v1575_v56  ;;  %1372 = vmatprep.mubr.msk.f32.mxu1 %vm1900_vm0, %v1901_v1  ;;  %v830_v56 = vld [vmem:[#allocation9 + $0x168] sm:$0xff] }
 0x1a3   : > { %v579_v63 = vmax.f32 %v554_v61, 0.0  ;;  %v1327_v2 = vpop.f32.mrb[3].mxu0  ;;  %1577 = vmatprep.subr.bf16.mxu1 %v1899_v0  ;;  %v1617_v57 = vpack.c.bf16 %v830_v56, %v829_v55 }
 0x1a5   : > { %584 = vst [vmem:[#allocation3 + $0x9] sm:$0xff] %v579_v63  ;;  %1373 = vmatmul.mubr.f32.gmra.mrb[2].mxu1 %v579_v63 }
 0x1a6   : > { %v559_v5 = vpop.f32.mrb[4].mxu0  ;;  %1579 = vmatpush3.bf16.msra.mxu1 %v1578_v62  ;;  %1375 = vmatprep.mubr.msk.f32.mxu1 %vm1900_vm0, %v1901_v1 }
 0x1a7   : > { %v580_v7 = vmax.f32 %v559_v5, 0.0  ;;  %v1330_v8 = vpop.f32.mrb[5].mxu0  ;;  %1580 = vmatprep.subr.bf16.mxu1 %v1899_v0 }
 0x1a8   : > { %v588_v37 = vld [vmem:[#allocation3] sm:$0xff] }
 0x1a9   : > { %585 = vst [vmem:[#allocation3 + $0x11] sm:$0xfc] %v580_v7 }
 0x1aa   : > { %v564_v11 = vpop.f32.mrb[6].mxu0  ;;  %1582 = vmatpush3.bf16.msra.mxu1 %v1581_v6 }
 0x1ab   : > { %v581_v13 = vmax.f32 %v564_v11, 0.0  ;;  %v1333_v14 = vpop.f32.mrb[7].mxu0  ;;  %1583 = vmatprep.subr.bf16.mxu1 %v1899_v0 }
 0x1ac   : > { %v589_v41 = vld [vmem:[#allocation3 + $0x8] sm:$0xff] }
 0x1ad   : > { %586 = vst [vmem:[#allocation3 + $0x19] sm:$0xff] %v581_v13  ;;  %v811_v61 = vld [vmem:[#allocation3 + $0x2] sm:$0xff]  ;;  %v812_v62 = vld [vmem:[#allocation3 + $0xa] sm:$0xff] }
 0x1ae   : > { %v569_v17 = vpop.f32.mrb[8].mxu0  ;;  %1585 = vmatpush3.bf16.msra.mxu1 %v1584_v12 }
 0x1af   : > { %v582_v19 = vmax.f32 %v569_v17, 0.0  ;;  %v1336_v20 = vpop.f32.mrb[9].mxu0  ;;  %1586 = vmatprep.subr.bf16.mxu1 %v1899_v0 }
 0x1b0   : > { %v611_v23 = vld [vmem:[#allocation3 + $0x11] sm:$0xff] }
 0x1b1   : > { %587 = vst [vmem:[#allocation3 + $0x21] sm:$0x3] %v582_v19  ;;  %1376 = vmatmul.mubr.f32.gmra.mrb[4].mxu1 %v611_v23  ;;  %v590_v45 = vld [vmem:[#allocation3 + $0x10] sm:$0xff] }
 0x1b2   : > { %1378 = vmatprep.mubr.msk.f32.mxu1 %vm1900_vm0, %v1901_v1  ;;  %1588 = vmatpush3.bf16.msra.mxu1 %v1587_v18 }
 0x1b3   : > { %1589 = vmatprep.subr.bf16.mxu1 %v1899_v0 }
 0x1b4   : > { %v591_v49 = vld [vmem:[#allocation3 + $0x18] sm:$0xff] }
 0x1b5   : > { %1379 = vmatmul.mubr.f32.gmra.mrb[6].mxu1 %v581_v13  ;;  %v813_v63 = vld [vmem:[#allocation3 + $0x12] sm:$0xff] }
 0x1b6   : > { %1381 = vmatprep.mubr.msk.f32.mxu1 %vm1900_vm0, %v1901_v1  ;;  %1591 = vmatpush3.bf16.msra.mxu1 %v1590_v24 }
 0x1b7   : > { %1592 = vmatprep.subr.bf16.mxu1 %v1899_v0 }
 0x1b8   : > { %v613_v30 = vld [vmem:[#allocation3 + $0x21] sm:$0x3] }
 0x1b9   : > { %1382 = vmatmul.mubr.f32.gmra.mrb[8].mxu1 %v613_v30  ;;  %v592_v53 = vld [vmem:[#allocation3 + $0x20] sm:$0x3] }
 0x1ba   : > { %1594 = vmatpush3.bf16.msra.mxu1 %v1593_v27  ;;  %1416 = vmatprep.mubr.msk.f32.mxu1 %vm1900_vm0, %v1901_v1  ;;  %v814_v2 = vld [vmem:[#allocation3 + $0x1a] sm:$0xff] }
 0x1bb   : > { %1595 = vmatprep.subr.bf16.mxu1 %v1899_v0 }
 0x1be   : > { %1597 = vmatpush3.bf16.msra.mxu1 %v1596_v31 }
 0x1bf   : > { %1598 = vmatprep.subr.bf16.mxu1 %v1899_v0 }
 0x1c1   : > { %1417 = vmatmul.mubr.f32.vlgmr.msra.gmra.mrb[0].mxu1 %v588_v37 }
 0x1c2   : > { %1600 = vmatpush3.bf16.msra.mxu1 %v1599_v34  ;;  %1419 = vmatprep.mubr.msk.f32.mxu1 %vm1900_vm0, %v1901_v1 }
 0x1c3   : > { %1601 = vmatprep.subr.bf16.mxu1 %v1899_v0 }
 0x1c5   : > { %1420 = vmatmul.mubr.f32.gmra.mrb[2].mxu1 %v589_v41 }
 0x1c6   : > { %1603 = vmatpush3.bf16.msra.mxu1 %v1602_v38  ;;  %1422 = vmatprep.mubr.msk.f32.mxu1 %vm1900_vm0, %v1901_v1 }
 0x1c7   : > { %1604 = vmatprep.subr.bf16.mxu1 %v1899_v0 }
 0x1c9   : > { %1423 = vmatmul.mubr.f32.gmra.mrb[4].mxu1 %v590_v45 }
 0x1ca   : > { %1606 = vmatpush3.bf16.msra.mxu1 %v1605_v42  ;;  %1425 = vmatprep.mubr.msk.f32.mxu1 %vm1900_vm0, %v1901_v1 }
 0x1cb   : > { %1607 = vmatprep.subr.bf16.mxu1 %v1899_v0 }
 0x1cd   : > { %1426 = vmatmul.mubr.f32.gmra.mrb[6].mxu1 %v591_v49 }
 0x1ce   : > { %1609 = vmatpush3.bf16.msra.mxu1 %v1608_v46  ;;  %1428 = vmatprep.mubr.msk.f32.mxu1 %vm1900_vm0, %v1901_v1 }
 0x1cf   : > { %1610 = vmatprep.subr.bf16.mxu1 %v1899_v0 }
 0x1d1   : > { %1429 = vmatmul.mubr.f32.gmra.mrb[8].mxu1 %v592_v53 }
 0x1d2   : > { %1612 = vmatpush3.bf16.msra.mxu1 %v1611_v50  ;;  %1463 = vmatprep.mubr.msk.f32.mxu1 %vm1900_vm0, %v1901_v1 }
 0x1d3   : > { %1613 = vmatprep.subr.bf16.mxu1 %v1899_v0 }
 0x1d6   : > { %1615 = vmatpush3.bf16.msra.mxu1 %v1614_v54 }
 0x1d7   : > { %1616 = vmatprep.subr.bf16.mxu1 %v1899_v0 }
 0x1da   : > { %1618 = vmatpush3.bf16.msra.mxu1 %v1617_v57 }
 0x1db   : > { %1619 = vmatprep.subr.bf16.mxu1 %v1899_v0  ;;  %v815_v0 = vld [vmem:[#allocation3 + $0x22] sm:$0x3] }
 0x1de   : > { %1621 = vmatpush3.bf16.msra.mxu1 %v1620_v60 }
 0x1e1   : > { %1464 = vmatmul.mubr.f32.vlgmr.msra.gmra.mrb[0].mxu1 %v811_v61 }
 0x1e2   : > { %1466 = vmatprep.mubr.msk.f32.mxu1 %vm1900_vm0, %v1901_v1 }
 0x1e5   : > { %1467 = vmatmul.mubr.f32.gmra.mrb[2].mxu1 %v812_v62 }
 0x1e6   : > { %1469 = vmatprep.mubr.msk.f32.mxu1 %vm1900_vm0, %v1901_v1 }
 0x1e9   : > { %1470 = vmatmul.mubr.f32.gmra.mrb[4].mxu1 %v813_v63 }
 0x1ea   : > { %1472 = vmatprep.mubr.msk.f32.mxu1 %vm1900_vm0, %v1901_v1 }
 0x1ed   : > { %1473 = vmatmul.mubr.f32.gmra.mrb[6].mxu1 %v814_v2 }
 0x1ee   : > { %1475 = vmatprep.mubr.msk.f32.mxu1 %vm1900_vm0, %v1901_v1 }
 0x1f1   : > { %1476 = vmatmul.mubr.f32.gmra.mrb[8].mxu1 %v815_v0 }
 0x2b4   : > { %v899_v3 = vpop.f32.mrb[0].mxu1 }
 0x2b5   : > { %928 = vst [vmem:[%s218_s18] sm:$0xff] %v899_v3  ;;  %v1465_v4 = vpop.f32.mrb[1].mxu1 }
 0x2b8   : > { %v904_v5 = vpop.f32.mrb[2].mxu1 }
 0x2b9   : > { %929 = vst [vmem:[%s218_s18 + $0x8] sm:$0xff] %v904_v5  ;;  %v1468_v6 = vpop.f32.mrb[3].mxu1 }
 0x2bc   : > { %v909_v7 = vpop.f32.mrb[4].mxu1 }
 0x2bd   : > { %1057 = vst [vmem:[%s218_s18 + $0xe] sm:$0xfc] %v909_v7  ;;  %v1471_v8 = vpop.f32.mrb[5].mxu1 }
 0x2c0   : > { %v914_v9 = vpop.f32.mrb[6].mxu1 }
 0x2c1   : > { %1058 = vst [vmem:[%s218_s18 + $0x16] sm:$0xff] %v914_v9  ;;  %v1474_v1 = vpop.f32.mrb[7].mxu1 }
 0x2c4   : > { %v919_v10 = vpop.f32.mrb[8].mxu1 }
 0x2c5   : > { %1059 = vst [vmem:[%s218_s18 + $0x1e] sm:$0x3] %v919_v10  ;;  %v1477_v11 = vpop.f32.mrb[9].mxu1 }
 0x2c6   : > { %1835 = shalt.err (!%p1832_p1)
}
 0x2c7   : > { %s1836_s10 = scalar_lea.hbm %s2254_s27, 512  ;;  %s1840_s26 = scalar_lea.hbm %s2301_s3, 1024 }
 0x2c8   : > { %p1837_p13 = scmp.ne.s32.totalorder %s2254_s27, %s1836_s10  ;;  %p1841_p4 = scmp.lt.u32.totalorder %s2254_s27, %s2301_s3 }
 0x2c9   : > { %p1842_p5 = scmp.lt.u32.totalorder %s1840_s26, %s1836_s10  ;;  %p1844_p11 = scmp.lt.u32.totalorder %s1836_s10, %s2254_s27 }
 0x2ca   : > { %p1838_p6 = pnand %p1837_p13, %p2315_p0 }
 0x2cb   : > { %p1843_p8 = por %p1842_p5, %p1841_p4 }
 0x2cc   : > { %p1839_p10 = pneg %p1838_p6 }
 0x2cd   : > { %p1845_p2 = por %p1844_p11, %p1843_p8 }
 0x2cf   : > { %p1846_p3 = pnand %p1845_p2, %p1839_p10 }
 0x2d1   : > { %1849 = shalt.err (!%p1846_p3)
}
 0x2d2   : > { %s1903_s28 = smov 128   ;;  %s1904_s18 = smov 8  }
 0x2d3   : > { %1672 = dma.vmem_to_hbm [thread:$0]  (%p2315_p0), %s2249_s20, 512, %s2254_s27, %s935_s22, %s1903_s28, %s1903_s28, %s1904_s18  }
 0x2d4 PF: > { %s964_s7 = sand.u32 1, %s1880_s12   ;;  %p2316_p7 = scmp.ne.s32.totalorder %s2306_s19, 0 }
 0x2d5   : > { %p2317_p9 = scmp.ge.s32.totalorder %s1892_s15, 2  ;;  %s965_s8 = scalar_lea.sflag [#allocation6], %s964_s7 }
 0x2d7   : > { %p1686_p12 = pnand %p2317_p9, %p2316_p7 }
 0x2d9   : > { %1875 = dma.done.wait (!%p1686_p12), %s965_s8, 512  }
 0x2da   : > { %1877 = vsyncadd (!%p1686_p12), %s965_s8, 4294966784  ;;  %p17_p1 = scmp.ge.s32.totalorder %s2041_s23, 4   ;;  %s2318_s12 = smov %s1884_s13 }
 0x2db   : > { %s2319_s13 = smov %s1888_s14  ;;  %s2320_s14 = smov %s2057_s9 }
 0x2dc   : > { %s2321_s15 = smov %s2041_s23  ;;  %19 = sbr.rel (!%p17_p1) target bundleno = 6 (0x6), region = 91 }
 0x2e3   :  { %970 = vsyncpa [#allocation5], 1 }
 0x2e4   :  { %972 = vsyncpa [#allocation5 + $0x1], 1 }
 0x2e5   :  { %973 = vsyncpa [#allocation8], 1 }
 0x2e6   :  { %974 = vsyncpa [#allocation6], 1 }
 0x2e7   :  { %976 = vsyncpa [#allocation6 + $0x1], 1 }

</bundles_post_ra>
